<compile_context>
chip_gen: v7x
topology: tpu7x:2x2x1
jax: 0.10.0
libtpu: 0.0.40
codegen_flags: <defaults>
</compile_context>

<pallas_src>
import functools

import jax
import jax.numpy as jnp
from jax.experimental import pallas as pl
from jax.experimental.pallas import tpu as pltpu


def _cnnmax_kernel(x_ref, w_ref, shift_ref, o_ref, xp_ref, rhs_ref, *,
                   k, d, p, w_in, w_pad, w_out):
    """One (row-tile, c_out-tile) grid step.

    x_ref     : (tile_r, c_in, w_in)      VMEM  unpadded rows (row = one (n, h))
    w_ref     : (tile_co, k*c_in)         VMEM  BN-scale-folded conv weights
    shift_ref : (tile_co, 1)              VMEM  folded conv-bias + BN shift
    o_ref     : (tile_r, tile_co, w_out)  VMEM  output rows
    xp_ref    : (c_in, tile_r*w_pad)      VMEM  zero-padded rows, flattened along W
    rhs_ref   : (k*c_in, nf)              VMEM  im2col RHS (k shifted copies stacked)
    """
    tile_r, c_in, _ = x_ref.shape
    nf = rhs_ref.shape[1]            # tile_r * w_pad - d * (k - 1)

    # Build the padded + im2col'd RHS only once per row-tile.  The c_out grid
    # axis is innermost and "arbitrary" (sequential per core), so the scratch
    # contents carry across c_out tiles and the rebuild is skipped for them.
    @pl.when(pl.program_id(1) == 0)
    def _build():
        xp_ref[...] = jnp.zeros_like(xp_ref)                 # zero pads
        for r in range(tile_r):
            xp_ref[:, r * w_pad + p: r * w_pad + p + w_in] = x_ref[r]
        # Row j*c_in + c of rhs holds xp[c, t + j*d].  Because each row's
        # padded segment has length w_pad = w_out + d*(k-1), valid outputs for
        # row r (columns [r*w_pad, r*w_pad + w_out)) only ever read inside row
        # r's segment; the d*(k-1) columns in between are never stored.
        for j in range(k):
            rhs_ref[j * c_in:(j + 1) * c_in, :] = xp_ref[:, j * d: j * d + nf]

    # ONE MXU matmul per block: (tile_co, k*c_in) @ (k*c_in, nf), f32 accum.
    y = jnp.dot(w_ref[...], rhs_ref[...], preferred_element_type=jnp.float32)
    y = y + shift_ref[...]                                    # conv bias + BN shift
    y = y * pl.reciprocal(1.0 + jnp.exp(-y), approx=True)     # Swish (exp + rcp on EUP)
    y = y.astype(o_ref.dtype)
    for r in range(tile_r):                                   # dense (tile_co, w_out) stores
        o_ref[r] = y[:, r * w_pad: r * w_pad + w_out]


def _choose_tiles(r_total, c_in, c_out, w, w_pad, w_out, k, itemsize, budget_bytes):
    """Pick (tile_r, tile_co) under a per-step VMEM budget."""
    co_cands = [t for t in (256, 128, 64, 32, 16, 8) if t <= c_out and c_out % t == 0]
    if not co_cands:
        co_cands = [c_out]          # full-dim block is always layout-legal
    r_cands = [t for t in (64, 32, 16, 8, 4, 2, 1) if t <= r_total and r_total % t == 0]
    if not r_cands:
        r_cands = [1]

    def fits(tr, tco):
        in_blk = 2 * tr * c_in * w * itemsize                 # double-buffered input
        w_blk = 2 * tco * k * c_in * itemsize                 # double-buffered weights
        out_blk = 2 * tr * tco * w_out * 4                    # double-buffered f32 output
        scr = (1 + k) * c_in * tr * w_pad * itemsize          # xp + im2col scratch
        tmp = 2 * tco * tr * w_pad * 4                        # matmul result + swish temp
        return in_blk + w_blk + out_blk + scr + tmp <= budget_bytes

    # Prefer >= 2 row-tiles so the "parallel" grid axis can shard across the
    # two TensorCores on v7x.
    for want_two in (True, False):
        for tco in co_cands:
            for tr in r_cands:
                if want_two and r_total >= 2 and r_total // tr < 2:
                    continue
                if fits(tr, tco):
                    return tr, tco
    return min(r_cands), min(co_cands)


def cnnmax_forward(x, weight, bias, gamma, beta, running_mean, running_var,
                   *, k, d, p, eps=1e-5, compute_dtype=jnp.float32):
    """x: (N, C_in, H, W); weight: (C_out, C_in, 1, k). Returns (N, C_out, H, W_out)."""
    if p < 1:
        # TODO(synk): p == 0 implies a negative right pad (PyTorch crops); not supported.
        raise ValueError("cnnmax_forward requires p >= 1")

    n, c_in, h, w = x.shape
    c_out = weight.shape[0]
    w_pad = w + 2 * p - 1
    w_out = w_pad - d * (k - 1)
    if w_out < 1:
        raise ValueError("non-positive output width")
    r_total = n * h

    # Fold conv bias + inference-mode BatchNorm2d into the weights / a shift:
    #   y = conv(x, W * g/sqrt(var+eps)) + [beta + (b - mu) * g/sqrt(var+eps)]
    inv_std = jax.lax.rsqrt(running_var.astype(jnp.float32) + eps)
    scale = gamma.astype(jnp.float32) * inv_std                           # (c_out,)
    shift = (beta.astype(jnp.float32)
             + (bias.astype(jnp.float32) - running_mean.astype(jnp.float32)) * scale
             ).reshape(c_out, 1)
    # Weight -> (c_out, k*c_in), tap-major to match the im2col RHS row order.
    w_fold = weight[:, :, 0, :].astype(jnp.float32) * scale[:, None, None]  # (c_out, c_in, k)
    w2 = jnp.transpose(w_fold, (0, 2, 1)).reshape(c_out, k * c_in).astype(compute_dtype)

    # The (1, k) conv never mixes H -> treat (N, H) as a flat batch of rows.
    xr = jnp.transpose(x, (0, 2, 1, 3)).reshape(r_total, c_in, w).astype(compute_dtype)
    itemsize = jnp.dtype(compute_dtype).itemsize

    # VMEM budget per generation (v7x: 64 MiB/TC physical vs 128 MiB on v5e/v6e).
    try:
        vmem_cap = pltpu.get_tpu_info().vmem_capacity_bytes
    except Exception:
        vmem_cap = 64 * 1024 * 1024
    vmem_limit = max(min(vmem_cap - 16 * 1024 * 1024, 100 * 1024 * 1024), vmem_cap // 2)
    tile_r, tile_co = _choose_tiles(r_total, c_in, c_out, w, w_pad, w_out, k,
                                    itemsize, budget_bytes=int(vmem_limit * 0.85))

    nf = tile_r * w_pad - d * (k - 1)
    grid = (r_total // tile_r, c_out // tile_co)   # c_out innermost: input re-DMA elided

    kernel = functools.partial(_cnnmax_kernel, k=k, d=d, p=p,
                               w_in=w, w_pad=w_pad, w_out=w_out)

    cost = pl.CostEstimate(
        flops=2 * r_total * c_out * c_in * k * w_out,
        transcendentals=r_total * c_out * w_out,                 # exp in the sigmoid
        bytes_accessed=(r_total * c_in * w * itemsize
                        + c_out * k * c_in * itemsize + c_out * 4
                        + r_total * c_out * w_out * 4))

    out_flat = pl.pallas_call(
        kernel,
        out_shape=jax.ShapeDtypeStruct((r_total, c_out, w_out), jnp.float32),
        grid=grid,
        in_specs=[
            pl.BlockSpec((tile_r, c_in, w), lambda ri, co: (ri, 0, 0)),
            pl.BlockSpec((tile_co, k * c_in), lambda ri, co: (co, 0)),
            pl.BlockSpec((tile_co, 1), lambda ri, co: (co, 0)),
        ],
        out_specs=pl.BlockSpec((tile_r, tile_co, w_out), lambda ri, co: (ri, co, 0)),
        scratch_shapes=[
            pltpu.VMEM((c_in, tile_r * w_pad), compute_dtype),   # padded rows
            pltpu.VMEM((k * c_in, nf), compute_dtype),           # im2col RHS
        ],
        compiler_params=pltpu.CompilerParams(
            dimension_semantics=("parallel", "arbitrary"),
            vmem_limit_bytes=vmem_limit),
        cost_estimate=cost,
    )(xr, w2, shift)

    out = out_flat.reshape(n, h, c_out, w_out)
    return jnp.transpose(out, (0, 2, 1, 3))          # back to NCHW


def _reference(x, weight, bias, gamma, beta, running_mean, running_var,
               *, k, d, p, eps=1e-5):
    """Pure-JAX reference (lax conv) mirroring the PyTorch forward."""
    x_pad = jnp.pad(x, ((0, 0), (0, 0), (0, 0), (p, p - 1)))
    y = jax.lax.conv_general_dilated(
        x_pad, weight, window_strides=(1, 1), padding="VALID",
        rhs_dilation=(1, d), dimension_numbers=("NCHW", "OIHW", "NCHW"),
        precision=jax.lax.Precision.HIGHEST)
    y = y + bias[None, :, None, None]
    inv_std = 1.0 / jnp.sqrt(running_var + eps)
    y = (y - running_mean[None, :, None, None]) * inv_std[None, :, None, None]
    y = y * gamma[None, :, None, None] + beta[None, :, None, None]
    return y * jax.nn.sigmoid(y)


if __name__ == "__main__":
    # Small shapes consistent with the module: Conv2d over NCHW with a (1, k)
    # kernel.  OC=24 / tile_co=8 exercises the scratch reuse across c_out tiles.
    N, IC, OC, H, W = 2, 4, 24, 16, 16
    K, D, P = 3, 1, 2

    key = jax.random.PRNGKey(0)
    kx, kw, kb, kg, kbeta, km, kv = jax.random.split(key, 7)

    x = jax.random.normal(kx, (N, IC, H, W), dtype=jnp.float32)
    weight = jax.random.normal(kw, (OC, IC, 1, K), dtype=jnp.float32) * 0.1
    bias = jax.random.normal(kb, (OC,), dtype=jnp.float32) * 0.1
    gamma = 1.0 + 0.1 * jax.random.normal(kg, (OC,), dtype=jnp.float32)
    beta = 0.1 * jax.random.normal(kbeta, (OC,), dtype=jnp.float32)
    running_mean = 0.1 * jax.random.normal(km, (OC,), dtype=jnp.float32)
    running_var = jnp.abs(jax.random.normal(kv, (OC,), dtype=jnp.float32)) + 0.5

    out = cnnmax_forward(x, weight, bias, gamma, beta, running_mean, running_var,
                         k=K, d=D, p=P)
    out = jax.block_until_ready(out)

    ref = _reference(x, weight, bias, gamma, beta, running_mean, running_var,
                     k=K, d=D, p=P)
    assert out.shape == ref.shape, (out.shape, ref.shape)
    max_err = float(jnp.max(jnp.abs(out - ref)))
    # Default (single-pass) MXU precision + approx reciprocal -> looser tolerance
    # than the Precision.HIGHEST reference.
    assert jnp.allclose(out, ref, rtol=2e-2, atol=2e-2), max_err

    print("KERNEL_OK")
</pallas_src>

<mosaic_0001>
module attributes {stable_mosaic.version = 11 : i64} {
  func.func @_cnnmax_kernel(%arg0: i32, %arg1: i32, %arg2: memref<16x4x16xf32, #tpu.memory_space<vmem>>, %arg3: memref<8x12xf32, #tpu.memory_space<vmem>>, %arg4: memref<8x1xf32, #tpu.memory_space<vmem>>, %arg5: memref<16x8x17xf32, #tpu.memory_space<vmem>>, %arg6: memref<4x304xf32, #tpu.memory_space<vmem>>, %arg7: memref<12x302xf32, #tpu.memory_space<vmem>>) attributes {dimension_semantics = [#tpu.dimension_semantics<parallel>, #tpu.dimension_semantics<arbitrary>], iteration_bounds = array<i64: 2, 3>, scalar_prefetch = 0 : i64, scratch_operands = 2 : i64, tpu.core_type = #tpu.core_type<tc>, window_params = [{transform_indices = @transform_0, window_bounds = array<i64: 16, 4, 16>}, {transform_indices = @transform_1, window_bounds = array<i64: 8, 12>}, {transform_indices = @transform_2, window_bounds = array<i64: 8, 1>}, {transform_indices = @transform_3, window_bounds = array<i64: 16, 8, 17>}]} {
    %c0_i32 = arith.constant 0 : i32
    %0 = arith.cmpi eq, %arg1, %c0_i32 : i32
    %1 = arith.extui %0 : i1 to i32
    %c0_i32_0 = arith.constant 0 : i32
    %2 = arith.cmpi ne, %1, %c0_i32_0 : i32
    scf.if %2 {
      %cst_41 = arith.constant 0.000000e+00 : f32
      %80 = vector.broadcast %cst_41 : f32 to vector<4x304xf32>
      %c0_42 = arith.constant 0 : index
      %c0_43 = arith.constant 0 : index
      %81 = vector.load %arg6[%c0_42, %c0_43] : memref<4x304xf32, #tpu.memory_space<vmem>>, vector<4x304xf32>
      tpu.vector_store %arg6[%c0_42, %c0_43], %80 {strides = array<i32>} : memref<4x304xf32, #tpu.memory_space<vmem>>, vector<4x304xf32>,
      %c0_44 = arith.constant 0 : index
      %c0_45 = arith.constant 0 : index
      %c0_46 = arith.constant 0 : index
      %82 = vector.load %arg2[%c0_44, %c0_45, %c0_46] : memref<16x4x16xf32, #tpu.memory_space<vmem>>, vector<1x4x16xf32>
      %83 = vector.shape_cast %82 : vector<1x4x16xf32> to vector<4x16xf32>
      %c0_47 = arith.constant 0 : index
      %c2_48 = arith.constant 2 : index
      %84 = vector.load %arg6[%c0_47, %c2_48] : memref<4x304xf32, #tpu.memory_space<vmem>>, vector<4x16xf32>
      tpu.vector_store %arg6[%c0_47, %c2_48], %83 {strides = array<i32>} : memref<4x304xf32, #tpu.memory_space<vmem>>, vector<4x16xf32>,
      %c1_49 = arith.constant 1 : index
      %c0_50 = arith.constant 0 : index
      %c0_51 = arith.constant 0 : index
      %85 = vector.load %arg2[%c1_49, %c0_50, %c0_51] : memref<16x4x16xf32, #tpu.memory_space<vmem>>, vector<1x4x16xf32>
      %86 = vector.shape_cast %85 : vector<1x4x16xf32> to vector<4x16xf32>
      %c0_52 = arith.constant 0 : index
      %c21 = arith.constant 21 : index
      %87 = vector.load %arg6[%c0_52, %c21] : memref<4x304xf32, #tpu.memory_space<vmem>>, vector<4x16xf32>
      tpu.vector_store %arg6[%c0_52, %c21], %86 {strides = array<i32>} : memref<4x304xf32, #tpu.memory_space<vmem>>, vector<4x16xf32>,
      %c2_53 = arith.constant 2 : index
      %c0_54 = arith.constant 0 : index
      %c0_55 = arith.constant 0 : index
      %88 = vector.load %arg2[%c2_53, %c0_54, %c0_55] : memref<16x4x16xf32, #tpu.memory_space<vmem>>, vector<1x4x16xf32>
      %89 = vector.shape_cast %88 : vector<1x4x16xf32> to vector<4x16xf32>
      %c0_56 = arith.constant 0 : index
      %c40 = arith.constant 40 : index
      %90 = vector.load %arg6[%c0_56, %c40] : memref<4x304xf32, #tpu.memory_space<vmem>>, vector<4x16xf32>
      tpu.vector_store %arg6[%c0_56, %c40], %89 {strides = array<i32>} : memref<4x304xf32, #tpu.memory_space<vmem>>, vector<4x16xf32>,
      %c3_57 = arith.constant 3 : index
      %c0_58 = arith.constant 0 : index
      %c0_59 = arith.constant 0 : index
      %91 = vector.load %arg2[%c3_57, %c0_58, %c0_59] : memref<16x4x16xf32, #tpu.memory_space<vmem>>, vector<1x4x16xf32>
      %92 = vector.shape_cast %91 : vector<1x4x16xf32> to vector<4x16xf32>
      %c0_60 = arith.constant 0 : index
      %c59 = arith.constant 59 : index
      %93 = vector.load %arg6[%c0_60, %c59] : memref<4x304xf32, #tpu.memory_space<vmem>>, vector<4x16xf32>
      tpu.vector_store %arg6[%c0_60, %c59], %92 {strides = array<i32>} : memref<4x304xf32, #tpu.memory_space<vmem>>, vector<4x16xf32>,
      %c4_61 = arith.constant 4 : index
      %c0_62 = arith.constant 0 : index
      %c0_63 = arith.constant 0 : index
      %94 = vector.load %arg2[%c4_61, %c0_62, %c0_63] : memref<16x4x16xf32, #tpu.memory_space<vmem>>, vector<1x4x16xf32>
      %95 = vector.shape_cast %94 : vector<1x4x16xf32> to vector<4x16xf32>
      %c0_64 = arith.constant 0 : index
      %c78 = arith.constant 78 : index
      %96 = vector.load %arg6[%c0_64, %c78] : memref<4x304xf32, #tpu.memory_space<vmem>>, vector<4x16xf32>
      tpu.vector_store %arg6[%c0_64, %c78], %95 {strides = array<i32>} : memref<4x304xf32, #tpu.memory_space<vmem>>, vector<4x16xf32>,
      %c5_65 = arith.constant 5 : index
      %c0_66 = arith.constant 0 : index
      %c0_67 = arith.constant 0 : index
      %97 = vector.load %arg2[%c5_65, %c0_66, %c0_67] : memref<16x4x16xf32, #tpu.memory_space<vmem>>, vector<1x4x16xf32>
      %98 = vector.shape_cast %97 : vector<1x4x16xf32> to vector<4x16xf32>
      %c0_68 = arith.constant 0 : index
      %c97 = arith.constant 97 : index
      %99 = vector.load %arg6[%c0_68, %c97] : memref<4x304xf32, #tpu.memory_space<vmem>>, vector<4x16xf32>
      tpu.vector_store %arg6[%c0_68, %c97], %98 {strides = array<i32>} : memref<4x304xf32, #tpu.memory_space<vmem>>, vector<4x16xf32>,
      %c6_69 = arith.constant 6 : index
      %c0_70 = arith.constant 0 : index
      %c0_71 = arith.constant 0 : index
      %100 = vector.load %arg2[%c6_69, %c0_70, %c0_71] : memref<16x4x16xf32, #tpu.memory_space<vmem>>, vector<1x4x16xf32>
      %101 = vector.shape_cast %100 : vector<1x4x16xf32> to vector<4x16xf32>
      %c0_72 = arith.constant 0 : index
      %c116 = arith.constant 116 : index
      %102 = vector.load %arg6[%c0_72, %c116] : memref<4x304xf32, #tpu.memory_space<vmem>>, vector<4x16xf32>
      tpu.vector_store %arg6[%c0_72, %c116], %101 {strides = array<i32>} : memref<4x304xf32, #tpu.memory_space<vmem>>, vector<4x16xf32>,
      %c7_73 = arith.constant 7 : index
      %c0_74 = arith.constant 0 : index
      %c0_75 = arith.constant 0 : index
      %103 = vector.load %arg2[%c7_73, %c0_74, %c0_75] : memref<16x4x16xf32, #tpu.memory_space<vmem>>, vector<1x4x16xf32>
      %104 = vector.shape_cast %103 : vector<1x4x16xf32> to vector<4x16xf32>
      %c0_76 = arith.constant 0 : index
      %c135 = arith.constant 135 : index
      %105 = vector.load %arg6[%c0_76, %c135] : memref<4x304xf32, #tpu.memory_space<vmem>>, vector<4x16xf32>
      tpu.vector_store %arg6[%c0_76, %c135], %104 {strides = array<i32>} : memref<4x304xf32, #tpu.memory_space<vmem>>, vector<4x16xf32>,
      %c8_77 = arith.constant 8 : index
      %c0_78 = arith.constant 0 : index
      %c0_79 = arith.constant 0 : index
      %106 = vector.load %arg2[%c8_77, %c0_78, %c0_79] : memref<16x4x16xf32, #tpu.memory_space<vmem>>, vector<1x4x16xf32>
      %107 = vector.shape_cast %106 : vector<1x4x16xf32> to vector<4x16xf32>
      %c0_80 = arith.constant 0 : index
      %c154 = arith.constant 154 : index
      %108 = vector.load %arg6[%c0_80, %c154] : memref<4x304xf32, #tpu.memory_space<vmem>>, vector<4x16xf32>
      tpu.vector_store %arg6[%c0_80, %c154], %107 {strides = array<i32>} : memref<4x304xf32, #tpu.memory_space<vmem>>, vector<4x16xf32>,
      %c9_81 = arith.constant 9 : index
      %c0_82 = arith.constant 0 : index
      %c0_83 = arith.constant 0 : index
      %109 = vector.load %arg2[%c9_81, %c0_82, %c0_83] : memref<16x4x16xf32, #tpu.memory_space<vmem>>, vector<1x4x16xf32>
      %110 = vector.shape_cast %109 : vector<1x4x16xf32> to vector<4x16xf32>
      %c0_84 = arith.constant 0 : index
      %c173 = arith.constant 173 : index
      %111 = vector.load %arg6[%c0_84, %c173] : memref<4x304xf32, #tpu.memory_space<vmem>>, vector<4x16xf32>
      tpu.vector_store %arg6[%c0_84, %c173], %110 {strides = array<i32>} : memref<4x304xf32, #tpu.memory_space<vmem>>, vector<4x16xf32>,
      %c10_85 = arith.constant 10 : index
      %c0_86 = arith.constant 0 : index
      %c0_87 = arith.constant 0 : index
      %112 = vector.load %arg2[%c10_85, %c0_86, %c0_87] : memref<16x4x16xf32, #tpu.memory_space<vmem>>, vector<1x4x16xf32>
      %113 = vector.shape_cast %112 : vector<1x4x16xf32> to vector<4x16xf32>
      %c0_88 = arith.constant 0 : index
      %c192 = arith.constant 192 : index
      %114 = vector.load %arg6[%c0_88, %c192] : memref<4x304xf32, #tpu.memory_space<vmem>>, vector<4x16xf32>
      tpu.vector_store %arg6[%c0_88, %c192], %113 {strides = array<i32>} : memref<4x304xf32, #tpu.memory_space<vmem>>, vector<4x16xf32>,
      %c11_89 = arith.constant 11 : index
      %c0_90 = arith.constant 0 : index
      %c0_91 = arith.constant 0 : index
      %115 = vector.load %arg2[%c11_89, %c0_90, %c0_91] : memref<16x4x16xf32, #tpu.memory_space<vmem>>, vector<1x4x16xf32>
      %116 = vector.shape_cast %115 : vector<1x4x16xf32> to vector<4x16xf32>
      %c0_92 = arith.constant 0 : index
      %c211 = arith.constant 211 : index
      %117 = vector.load %arg6[%c0_92, %c211] : memref<4x304xf32, #tpu.memory_space<vmem>>, vector<4x16xf32>
      tpu.vector_store %arg6[%c0_92, %c211], %116 {strides = array<i32>} : memref<4x304xf32, #tpu.memory_space<vmem>>, vector<4x16xf32>,
      %c12_93 = arith.constant 12 : index
      %c0_94 = arith.constant 0 : index
      %c0_95 = arith.constant 0 : index
      %118 = vector.load %arg2[%c12_93, %c0_94, %c0_95] : memref<16x4x16xf32, #tpu.memory_space<vmem>>, vector<1x4x16xf32>
      %119 = vector.shape_cast %118 : vector<1x4x16xf32> to vector<4x16xf32>
      %c0_96 = arith.constant 0 : index
      %c230 = arith.constant 230 : index
      %120 = vector.load %arg6[%c0_96, %c230] : memref<4x304xf32, #tpu.memory_space<vmem>>, vector<4x16xf32>
      tpu.vector_store %arg6[%c0_96, %c230], %119 {strides = array<i32>} : memref<4x304xf32, #tpu.memory_space<vmem>>, vector<4x16xf32>,
      %c13_97 = arith.constant 13 : index
      %c0_98 = arith.constant 0 : index
      %c0_99 = arith.constant 0 : index
      %121 = vector.load %arg2[%c13_97, %c0_98, %c0_99] : memref<16x4x16xf32, #tpu.memory_space<vmem>>, vector<1x4x16xf32>
      %122 = vector.shape_cast %121 : vector<1x4x16xf32> to vector<4x16xf32>
      %c0_100 = arith.constant 0 : index
      %c249 = arith.constant 249 : index
      %123 = vector.load %arg6[%c0_100, %c249] : memref<4x304xf32, #tpu.memory_space<vmem>>, vector<4x16xf32>
      tpu.vector_store %arg6[%c0_100, %c249], %122 {strides = array<i32>} : memref<4x304xf32, #tpu.memory_space<vmem>>, vector<4x16xf32>,
      %c14_101 = arith.constant 14 : index
      %c0_102 = arith.constant 0 : index
      %c0_103 = arith.constant 0 : index
      %124 = vector.load %arg2[%c14_101, %c0_102, %c0_103] : memref<16x4x16xf32, #tpu.memory_space<vmem>>, vector<1x4x16xf32>
      %125 = vector.shape_cast %124 : vector<1x4x16xf32> to vector<4x16xf32>
      %c0_104 = arith.constant 0 : index
      %c268 = arith.constant 268 : index
      %126 = vector.load %arg6[%c0_104, %c268] : memref<4x304xf32, #tpu.memory_space<vmem>>, vector<4x16xf32>
      tpu.vector_store %arg6[%c0_104, %c268], %125 {strides = array<i32>} : memref<4x304xf32, #tpu.memory_space<vmem>>, vector<4x16xf32>,
      %c15_105 = arith.constant 15 : index
      %c0_106 = arith.constant 0 : index
      %c0_107 = arith.constant 0 : index
      %127 = vector.load %arg2[%c15_105, %c0_106, %c0_107] : memref<16x4x16xf32, #tpu.memory_space<vmem>>, vector<1x4x16xf32>
      %128 = vector.shape_cast %127 : vector<1x4x16xf32> to vector<4x16xf32>
      %c0_108 = arith.constant 0 : index
      %c287 = arith.constant 287 : index
      %129 = vector.load %arg6[%c0_108, %c287] : memref<4x304xf32, #tpu.memory_space<vmem>>, vector<4x16xf32>
      tpu.vector_store %arg6[%c0_108, %c287], %128 {strides = array<i32>} : memref<4x304xf32, #tpu.memory_space<vmem>>, vector<4x16xf32>,
      %c0_109 = arith.constant 0 : index
      %c0_110 = arith.constant 0 : index
      %130 = vector.load %arg6[%c0_109, %c0_110] : memref<4x304xf32, #tpu.memory_space<vmem>>, vector<4x302xf32>
      %c0_111 = arith.constant 0 : index
      %c0_112 = arith.constant 0 : index
      %131 = vector.load %arg7[%c0_111, %c0_112] : memref<12x302xf32, #tpu.memory_space<vmem>>, vector<4x302xf32>
      tpu.vector_store %arg7[%c0_111, %c0_112], %130 {strides = array<i32>} : memref<12x302xf32, #tpu.memory_space<vmem>>, vector<4x302xf32>,
      %c0_113 = arith.constant 0 : index
      %c1_114 = arith.constant 1 : index
      %132 = vector.load %arg6[%c0_113, %c1_114] : memref<4x304xf32, #tpu.memory_space<vmem>>, vector<4x302xf32>
      %c4_115 = arith.constant 4 : index
      %c0_116 = arith.constant 0 : index
      %133 = vector.load %arg7[%c4_115, %c0_116] : memref<12x302xf32, #tpu.memory_space<vmem>>, vector<4x302xf32>
      tpu.vector_store %arg7[%c4_115, %c0_116], %132 {strides = array<i32>} : memref<12x302xf32, #tpu.memory_space<vmem>>, vector<4x302xf32>,
      %c0_117 = arith.constant 0 : index
      %c2_118 = arith.constant 2 : index
      %134 = vector.load %arg6[%c0_117, %c2_118] : memref<4x304xf32, #tpu.memory_space<vmem>>, vector<4x302xf32>
      %c8_119 = arith.constant 8 : index
      %c0_120 = arith.constant 0 : index
      %135 = vector.load %arg7[%c8_119, %c0_120] : memref<12x302xf32, #tpu.memory_space<vmem>>, vector<4x302xf32>
      tpu.vector_store %arg7[%c8_119, %c0_120], %134 {strides = array<i32>} : memref<12x302xf32, #tpu.memory_space<vmem>>, vector<4x302xf32>,
    } else {
    }
    %c0 = arith.constant 0 : index
    %c0_1 = arith.constant 0 : index
    %3 = vector.load %arg3[%c0, %c0_1] : memref<8x12xf32, #tpu.memory_space<vmem>>, vector<8x12xf32>
    %c0_2 = arith.constant 0 : index
    %c0_3 = arith.constant 0 : index
    %4 = vector.load %arg7[%c0_2, %c0_3] : memref<12x302xf32, #tpu.memory_space<vmem>>, vector<12x302xf32>
    %cst = arith.constant dense<0.000000e+00> : vector<8x302xf32>
    %5 = tpu.matmul %3, %4, %cst {dimension_numbers = #tpu.dot_dimension_numbers<[1], [0], [0], [1], [0, 0, 1, 1], [], []>} : vector<8x12xf32>, vector<12x302xf32>, vector<8x302xf32> -> vector<8x302xf32>
    %c0_4 = arith.constant 0 : index
    %c0_5 = arith.constant 0 : index
    %6 = vector.load %arg4[%c0_4, %c0_5] : memref<8x1xf32, #tpu.memory_space<vmem>>, vector<8x1xf32>
    %7 = vector.broadcast %6 : vector<8x1xf32> to vector<8x302xf32>
    %8 = arith.addf %5, %7 : vector<8x302xf32>
    %cst_6 = arith.constant 0.000000e+00 : f32
    %9 = vector.broadcast %cst_6 : f32 to vector<8x302xf32>
    %10 = arith.subf %9, %8 : vector<8x302xf32>
    %11 = math.exp %10 : vector<8x302xf32>
    %cst_7 = arith.constant 1.000000e+00 : f32
    %12 = vector.broadcast %cst_7 : f32 to vector<8x302xf32>
    %13 = arith.addf %12, %11 : vector<8x302xf32>
    %14 = tpu.reciprocal %13 {approx = true} : vector<8x302xf32> -> vector<8x302xf32>
    %15 = arith.mulf %8, %14 : vector<8x302xf32>
    %16 = vector.extract_strided_slice %15 {offsets = [0, 0], sizes = [8, 17], strides = [1, 1]} : vector<8x302xf32> to vector<8x17xf32>
    %c0_8 = arith.constant 0 : index
    %c0_9 = arith.constant 0 : index
    %c0_10 = arith.constant 0 : index
    %17 = vector.load %arg5[%c0_8, %c0_9, %c0_10] : memref<16x8x17xf32, #tpu.memory_space<vmem>>, vector<1x8x17xf32>
    %18 = vector.shape_cast %17 : vector<1x8x17xf32> to vector<8x17xf32>
    %19 = vector.shape_cast %16 : vector<8x17xf32> to vector<1x8x17xf32>
    tpu.vector_store %arg5[%c0_8, %c0_9, %c0_10], %19 {strides = array<i32>} : memref<16x8x17xf32, #tpu.memory_space<vmem>>, vector<1x8x17xf32>,
    %20 = vector.extract_strided_slice %15 {offsets = [0, 19], sizes = [8, 17], strides = [1, 1]} : vector<8x302xf32> to vector<8x17xf32>
    %c1 = arith.constant 1 : index
    %c0_11 = arith.constant 0 : index
    %c0_12 = arith.constant 0 : index
    %21 = vector.load %arg5[%c1, %c0_11, %c0_12] : memref<16x8x17xf32, #tpu.memory_space<vmem>>, vector<1x8x17xf32>
    %22 = vector.shape_cast %21 : vector<1x8x17xf32> to vector<8x17xf32>
    %23 = vector.shape_cast %20 : vector<8x17xf32> to vector<1x8x17xf32>
    tpu.vector_store %arg5[%c1, %c0_11, %c0_12], %23 {strides = array<i32>} : memref<16x8x17xf32, #tpu.memory_space<vmem>>, vector<1x8x17xf32>,
    %24 = vector.extract_strided_slice %15 {offsets = [0, 38], sizes = [8, 17], strides = [1, 1]} : vector<8x302xf32> to vector<8x17xf32>
    %c2 = arith.constant 2 : index
    %c0_13 = arith.constant 0 : index
    %c0_14 = arith.constant 0 : index
    %25 = vector.load %arg5[%c2, %c0_13, %c0_14] : memref<16x8x17xf32, #tpu.memory_space<vmem>>, vector<1x8x17xf32>
    %26 = vector.shape_cast %25 : vector<1x8x17xf32> to vector<8x17xf32>
    %27 = vector.shape_cast %24 : vector<8x17xf32> to vector<1x8x17xf32>
    tpu.vector_store %arg5[%c2, %c0_13, %c0_14], %27 {strides = array<i32>} : memref<16x8x17xf32, #tpu.memory_space<vmem>>, vector<1x8x17xf32>,
    %28 = vector.extract_strided_slice %15 {offsets = [0, 57], sizes = [8, 17], strides = [1, 1]} : vector<8x302xf32> to vector<8x17xf32>
    %c3 = arith.constant 3 : index
    %c0_15 = arith.constant 0 : index
    %c0_16 = arith.constant 0 : index
    %29 = vector.load %arg5[%c3, %c0_15, %c0_16] : memref<16x8x17xf32, #tpu.memory_space<vmem>>, vector<1x8x17xf32>
    %30 = vector.shape_cast %29 : vector<1x8x17xf32> to vector<8x17xf32>
    %31 = vector.shape_cast %28 : vector<8x17xf32> to vector<1x8x17xf32>
    tpu.vector_store %arg5[%c3, %c0_15, %c0_16], %31 {strides = array<i32>} : memref<16x8x17xf32, #tpu.memory_space<vmem>>, vector<1x8x17xf32>,
    %32 = vector.extract_strided_slice %15 {offsets = [0, 76], sizes = [8, 17], strides = [1, 1]} : vector<8x302xf32> to vector<8x17xf32>
    %c4 = arith.constant 4 : index
    %c0_17 = arith.constant 0 : index
    %c0_18 = arith.constant 0 : index
    %33 = vector.load %arg5[%c4, %c0_17, %c0_18] : memref<16x8x17xf32, #tpu.memory_space<vmem>>, vector<1x8x17xf32>
    %34 = vector.shape_cast %33 : vector<1x8x17xf32> to vector<8x17xf32>
    %35 = vector.shape_cast %32 : vector<8x17xf32> to vector<1x8x17xf32>
    tpu.vector_store %arg5[%c4, %c0_17, %c0_18], %35 {strides = array<i32>} : memref<16x8x17xf32, #tpu.memory_space<vmem>>, vector<1x8x17xf32>,
    %36 = vector.extract_strided_slice %15 {offsets = [0, 95], sizes = [8, 17], strides = [1, 1]} : vector<8x302xf32> to vector<8x17xf32>
    %c5 = arith.constant 5 : index
    %c0_19 = arith.constant 0 : index
    %c0_20 = arith.constant 0 : index
    %37 = vector.load %arg5[%c5, %c0_19, %c0_20] : memref<16x8x17xf32, #tpu.memory_space<vmem>>, vector<1x8x17xf32>
    %38 = vector.shape_cast %37 : vector<1x8x17xf32> to vector<8x17xf32>
    %39 = vector.shape_cast %36 : vector<8x17xf32> to vector<1x8x17xf32>
    tpu.vector_store %arg5[%c5, %c0_19, %c0_20], %39 {strides = array<i32>} : memref<16x8x17xf32, #tpu.memory_space<vmem>>, vector<1x8x17xf32>,
    %40 = vector.extract_strided_slice %15 {offsets = [0, 114], sizes = [8, 17], strides = [1, 1]} : vector<8x302xf32> to vector<8x17xf32>
    %c6 = arith.constant 6 : index
    %c0_21 = arith.constant 0 : index
    %c0_22 = arith.constant 0 : index
    %41 = vector.load %arg5[%c6, %c0_21, %c0_22] : memref<16x8x17xf32, #tpu.memory_space<vmem>>, vector<1x8x17xf32>
    %42 = vector.shape_cast %41 : vector<1x8x17xf32> to vector<8x17xf32>
    %43 = vector.shape_cast %40 : vector<8x17xf32> to vector<1x8x17xf32>
    tpu.vector_store %arg5[%c6, %c0_21, %c0_22], %43 {strides = array<i32>} : memref<16x8x17xf32, #tpu.memory_space<vmem>>, vector<1x8x17xf32>,
    %44 = vector.extract_strided_slice %15 {offsets = [0, 133], sizes = [8, 17], strides = [1, 1]} : vector<8x302xf32> to vector<8x17xf32>
    %c7 = arith.constant 7 : index
    %c0_23 = arith.constant 0 : index
    %c0_24 = arith.constant 0 : index
    %45 = vector.load %arg5[%c7, %c0_23, %c0_24] : memref<16x8x17xf32, #tpu.memory_space<vmem>>, vector<1x8x17xf32>
    %46 = vector.shape_cast %45 : vector<1x8x17xf32> to vector<8x17xf32>
    %47 = vector.shape_cast %44 : vector<8x17xf32> to vector<1x8x17xf32>
    tpu.vector_store %arg5[%c7, %c0_23, %c0_24], %47 {strides = array<i32>} : memref<16x8x17xf32, #tpu.memory_space<vmem>>, vector<1x8x17xf32>,
    %48 = vector.extract_strided_slice %15 {offsets = [0, 152], sizes = [8, 17], strides = [1, 1]} : vector<8x302xf32> to vector<8x17xf32>
    %c8 = arith.constant 8 : index
    %c0_25 = arith.constant 0 : index
    %c0_26 = arith.constant 0 : index
    %49 = vector.load %arg5[%c8, %c0_25, %c0_26] : memref<16x8x17xf32, #tpu.memory_space<vmem>>, vector<1x8x17xf32>
    %50 = vector.shape_cast %49 : vector<1x8x17xf32> to vector<8x17xf32>
    %51 = vector.shape_cast %48 : vector<8x17xf32> to vector<1x8x17xf32>
    tpu.vector_store %arg5[%c8, %c0_25, %c0_26], %51 {strides = array<i32>} : memref<16x8x17xf32, #tpu.memory_space<vmem>>, vector<1x8x17xf32>,
    %52 = vector.extract_strided_slice %15 {offsets = [0, 171], sizes = [8, 17], strides = [1, 1]} : vector<8x302xf32> to vector<8x17xf32>
    %c9 = arith.constant 9 : index
    %c0_27 = arith.constant 0 : index
    %c0_28 = arith.constant 0 : index
    %53 = vector.load %arg5[%c9, %c0_27, %c0_28] : memref<16x8x17xf32, #tpu.memory_space<vmem>>, vector<1x8x17xf32>
    %54 = vector.shape_cast %53 : vector<1x8x17xf32> to vector<8x17xf32>
    %55 = vector.shape_cast %52 : vector<8x17xf32> to vector<1x8x17xf32>
    tpu.vector_store %arg5[%c9, %c0_27, %c0_28], %55 {strides = array<i32>} : memref<16x8x17xf32, #tpu.memory_space<vmem>>, vector<1x8x17xf32>,
    %56 = vector.extract_strided_slice %15 {offsets = [0, 190], sizes = [8, 17], strides = [1, 1]} : vector<8x302xf32> to vector<8x17xf32>
    %c10 = arith.constant 10 : index
    %c0_29 = arith.constant 0 : index
    %c0_30 = arith.constant 0 : index
    %57 = vector.load %arg5[%c10, %c0_29, %c0_30] : memref<16x8x17xf32, #tpu.memory_space<vmem>>, vector<1x8x17xf32>
    %58 = vector.shape_cast %57 : vector<1x8x17xf32> to vector<8x17xf32>
    %59 = vector.shape_cast %56 : vector<8x17xf32> to vector<1x8x17xf32>
    tpu.vector_store %arg5[%c10, %c0_29, %c0_30], %59 {strides = array<i32>} : memref<16x8x17xf32, #tpu.memory_space<vmem>>, vector<1x8x17xf32>,
    %60 = vector.extract_strided_slice %15 {offsets = [0, 209], sizes = [8, 17], strides = [1, 1]} : vector<8x302xf32> to vector<8x17xf32>
    %c11 = arith.constant 11 : index
    %c0_31 = arith.constant 0 : index
    %c0_32 = arith.constant 0 : index
    %61 = vector.load %arg5[%c11, %c0_31, %c0_32] : memref<16x8x17xf32, #tpu.memory_space<vmem>>, vector<1x8x17xf32>
    %62 = vector.shape_cast %61 : vector<1x8x17xf32> to vector<8x17xf32>
    %63 = vector.shape_cast %60 : vector<8x17xf32> to vector<1x8x17xf32>
    tpu.vector_store %arg5[%c11, %c0_31, %c0_32], %63 {strides = array<i32>} : memref<16x8x17xf32, #tpu.memory_space<vmem>>, vector<1x8x17xf32>,
    %64 = vector.extract_strided_slice %15 {offsets = [0, 228], sizes = [8, 17], strides = [1, 1]} : vector<8x302xf32> to vector<8x17xf32>
    %c12 = arith.constant 12 : index
    %c0_33 = arith.constant 0 : index
    %c0_34 = arith.constant 0 : index
    %65 = vector.load %arg5[%c12, %c0_33, %c0_34] : memref<16x8x17xf32, #tpu.memory_space<vmem>>, vector<1x8x17xf32>
    %66 = vector.shape_cast %65 : vector<1x8x17xf32> to vector<8x17xf32>
    %67 = vector.shape_cast %64 : vector<8x17xf32> to vector<1x8x17xf32>
    tpu.vector_store %arg5[%c12, %c0_33, %c0_34], %67 {strides = array<i32>} : memref<16x8x17xf32, #tpu.memory_space<vmem>>, vector<1x8x17xf32>,
    %68 = vector.extract_strided_slice %15 {offsets = [0, 247], sizes = [8, 17], strides = [1, 1]} : vector<8x302xf32> to vector<8x17xf32>
    %c13 = arith.constant 13 : index
    %c0_35 = arith.constant 0 : index
    %c0_36 = arith.constant 0 : index
    %69 = vector.load %arg5[%c13, %c0_35, %c0_36] : memref<16x8x17xf32, #tpu.memory_space<vmem>>, vector<1x8x17xf32>
    %70 = vector.shape_cast %69 : vector<1x8x17xf32> to vector<8x17xf32>
    %71 = vector.shape_cast %68 : vector<8x17xf32> to vector<1x8x17xf32>
    tpu.vector_store %arg5[%c13, %c0_35, %c0_36], %71 {strides = array<i32>} : memref<16x8x17xf32, #tpu.memory_space<vmem>>, vector<1x8x17xf32>,
    %72 = vector.extract_strided_slice %15 {offsets = [0, 266], sizes = [8, 17], strides = [1, 1]} : vector<8x302xf32> to vector<8x17xf32>
    %c14 = arith.constant 14 : index
    %c0_37 = arith.constant 0 : index
    %c0_38 = arith.constant 0 : index
    %73 = vector.load %arg5[%c14, %c0_37, %c0_38] : memref<16x8x17xf32, #tpu.memory_space<vmem>>, vector<1x8x17xf32>
    %74 = vector.shape_cast %73 : vector<1x8x17xf32> to vector<8x17xf32>
    %75 = vector.shape_cast %72 : vector<8x17xf32> to vector<1x8x17xf32>
    tpu.vector_store %arg5[%c14, %c0_37, %c0_38], %75 {strides = array<i32>} : memref<16x8x17xf32, #tpu.memory_space<vmem>>, vector<1x8x17xf32>,
    %76 = vector.extract_strided_slice %15 {offsets = [0, 285], sizes = [8, 17], strides = [1, 1]} : vector<8x302xf32> to vector<8x17xf32>
    %c15 = arith.constant 15 : index
    %c0_39 = arith.constant 0 : index
    %c0_40 = arith.constant 0 : index
    %77 = vector.load %arg5[%c15, %c0_39, %c0_40] : memref<16x8x17xf32, #tpu.memory_space<vmem>>, vector<1x8x17xf32>
    %78 = vector.shape_cast %77 : vector<1x8x17xf32> to vector<8x17xf32>
    %79 = vector.shape_cast %76 : vector<8x17xf32> to vector<1x8x17xf32>
    tpu.vector_store %arg5[%c15, %c0_39, %c0_40], %79 {strides = array<i32>} : memref<16x8x17xf32, #tpu.memory_space<vmem>>, vector<1x8x17xf32>,
    return
  }
  func.func @transform_0(%arg0: i32, %arg1: i32) -> (i32, i32, i32) {
    %c0_i32 = arith.constant 0 : i32
    %c0_i32_0 = arith.constant 0 : i32
    %c0_i32_1 = arith.constant 0 : i32
    return %arg0, %c0_i32, %c0_i32_0 : i32, i32, i32
  }
  func.func @transform_1(%arg0: i32, %arg1: i32) -> (i32, i32) {
    %c0_i32 = arith.constant 0 : i32
    %c0_i32_0 = arith.constant 0 : i32
    return %arg1, %c0_i32 : i32, i32
  }
  func.func @transform_2(%arg0: i32, %arg1: i32) -> (i32, i32) {
    %c0_i32 = arith.constant 0 : i32
    %c0_i32_0 = arith.constant 0 : i32
    return %arg1, %c0_i32 : i32, i32
  }
  func.func @transform_3(%arg0: i32, %arg1: i32) -> (i32, i32, i32) {
    %c0_i32 = arith.constant 0 : i32
    %c0_i32_0 = arith.constant 0 : i32
    return %arg0, %arg1, %c0_i32 : i32, i32, i32
  }
}

</mosaic_0001>

<bundles_post_ra>
// kernel: tpu_custom_call.1
= control target key start
LH: loop header
LB: loop body
LE: loop exit
PB: predicated region body
PF: predicated region fallthrough
CT: control target
= control target key end

     0   :  { %s1175_s12 = smov 0   ;;  %s1177_s13 = smov 0   ;;  %s1362_s0 = inlined_call_operand.vmem [shape: f32[32,4,16], index: 0, kind: input, shape index: {}]   ;;  %s1363_s1 = inlined_call_operand.vmem [shape: f32[24,12], index: 1, kind: input, shape index: {}]   ;;  %s1364_s2 = inlined_call_operand.vmem [shape: f32[24,1], index: 2, kind: input, shape index: {}]   ;;  %s1365_s3 = inlined_call_operand.vmem [shape: f32[32,24,17], index: 3, kind: output, shape index: {}]  }
   0x1   :  { %s1179_s14 = smov 0   ;;  %s1181_s15 = smov 0  }
   0x2   :  { %s1183_s16 = smov 0   ;;  %s1185_s17 = smov 0  }
   0x3   :  { %s1187_s18 = smov 0  }
   0x4 LB: > { %s22_s19 = sadd.s32 1, %s1106_s16  ;;  %s25_s20 = sadd.s32 1, %s1110_s17  ;;  %s1114_s18 = sphi %s1187_s18, %s13_s18   ;;  %s1110_s17 = sphi %s1185_s17, %s1374_s17   ;;  %s1106_s16 = sphi %s1183_s16, %s1373_s16   ;;  %s1102_s15 = sphi %s1181_s15, %s1372_s15   ;;  %s1098_s14 = sphi %s1179_s14, %s1371_s14   ;;  %s1094_s13 = sphi %s1177_s13, %s1370_s13   ;;  %s1090_s12 = sphi %s1175_s12, %s1369_s12  }
   0x5   : > { %p23_p0 = scmp.ge.s32.totalorder %s22_s19, 3  ;;  %s877_s21 = sadd.s32 4294967295, %s1114_s18  }
   0x6   : > { %p122_p1 = scmp.ne.s32.totalorder %s1094_s13, %s1090_s12  ;;  %p123_p2 = scmp.eq.s32.totalorder %s877_s21, 5 }
   0x7   : > { %s1376_s19 = smov (%p23_p0, %s22_s19), 0  ;;  %s1378_s20 = smov (!%p23_p0, %s25_s20), %s1110_s17 }
   0x8   : > { %s108_s22 = ssub.s32 %s1106_s16, %s1376_s19  ;;  %p27_p3 = scmp.ge.s32.totalorder %s1378_s20, 2 }
   0x9   : > { %p881_p4 = scmp.ge.s32.totalorder %s1114_s18, 1  ;;  %p1221_p5 = por %p123_p2, %p122_p1 }
   0xa   : > { %p170_p6 = scmp.lt.s32.totalorder %s1114_s18, 7  ;;  %s1380_s20 = smov (%p27_p3, %s1378_s20), 0 }
   0xb   : > { %s107_s24 = ssub.s32 %s1110_s17, %s1380_s20  ;;  %s112_s26 = sadd.s32 1, %s1094_s13 }
   0xc   : > { %p171_p7 = pnand %p881_p4, %p170_p6  ;;  %s109_s25 = sor.u32 %s108_s22, %s107_s24 }
   0xd   : > { %p110_p8 = scmp.eq.s32.totalorder %s109_s25, 0  ;;  %s198_s28 = sand.u32 (!%p171_p7), 1, %s1090_s12  }
   0xe   : > { %174 = sbr.rel (%p171_p7) target bundleno = 716 (0x2cc), region = 32  ;;  %s883_s29 = sshll.u32 (!%p171_p7), %s1102_s15, 4 }
   0xf   : > { %s1232_s27 = scalar_select %p110_p8, %s1094_s13, %s112_s26  }
  0x10   : > { %s882_s30 = sshll.u32 (!%p171_p7), %s198_s28, 7  ;;  %p202_p9 = scmp.lt.s32.totalorder (!%p171_p7), %s883_s29, 31 }
  0x11   : > { %p207_p10 = scmp.lt.s32.totalorder (!%p171_p7), %s1098_s14, 2  ;;  %s1253_s25 = scalar_lea.vmem (!%p171_p7), [#allocation4], %s882_s30 }
  0x12   : > { %p887_p11 = scmp.ne.s32.totalorder (!%p171_p7), %s1098_s14, 0 }
  0x15   : > { %s1382_s29 = smov (!%p202_p9, %s883_s29), 31  ;;  %219 = sbr.rel (%p887_p11) target bundleno = 303 (0x12f), region = 36 }
  0x16   : > { %s208_s4 = scalar_select %p207_p10, %s1098_s14, 2 }
  0x17   : > { %s884_s5 = sshll.u32 %s1382_s29, 2  ;;  %s1116_s26 = smov (!%p887_p11), 40   ;;  %vm221_vm0 = vcmask (!%p887_p11), 388096   ;;  %v1122_v6 = vmov (!%p887_p11), 0.0   ;;  %vm228_vm1 = vcmask (!%p887_p11), 142352   ;;  %vm236_vm2 = vcmask (!%p887_p11), 298152  }
  0x18   : > { %s1241_s8 = scalar_lea.vmem %s1362_s0, %s884_s5  ;;  %s885_s9 = sshll.u32 %s208_s4, 3  ;;  %220 = vst [vmem:[#allocation2] sm:$0xff] (!%p887_p11), %v1122_v6  ;;  %222 = vst.msk [vmem:[#allocation2 + $0x8] sm:$0xf] (!%p887_p11), %vm221_vm0, %v1122_v6  ;;  %vm244_vm3 = vcmask (!%p887_p11), 453952   ;;  %vm252_vm4 = vcmask (!%p887_p11), 609752  }
  0x19   : > { %s1246_s21 = scalar_lea.vmem %s1363_s1, %s885_s9  ;;  %s1251_s24 = scalar_lea.vmem %s1364_s2, %s885_s9  ;;  %v889_v0 = vld [vmem:[%s1241_s8 + $0x8] sm:$0xf] (!%p887_p11)  ;;  %v223_v1 = vld [vmem:[%s1241_s8] sm:$0xf] (!%p887_p11)  ;;  %v890_v2 = vld [vmem:[%s1241_s8 + $0xc] sm:$0xf] (!%p887_p11) }
  0x1a   : > { %241 = vrot.lane.b32.xlu1 (!%p887_p11), %v889_v0, %s1116_s26  ;;  %s1117_s28 = smov (!%p887_p11), 2   ;;  %v888_v3 = vld [vmem:[%s1241_s8 + $0x4] sm:$0xf] (!%p887_p11)  ;;  %s1118_s29 = smov (!%p887_p11), 59   ;;  %v891_v4 = vld [vmem:[%s1241_s8 + $0x10] sm:$0xf] (!%p887_p11) }
  0x1b   : > { %225 = vrot.lane.b32.xlu0 (!%p887_p11), %v223_v1, %s1117_s28  ;;  %s1119_s30 = smov (!%p887_p11), 21   ;;  %v893_v5 = vld [vmem:[%s1241_s8 + $0x18] sm:$0xf] (!%p887_p11)  ;;  %s1120_s4 = smov (!%p887_p11), 78   ;;  %v894_v7 = vld [vmem:[%s1241_s8 + $0x1c] sm:$0xf] (!%p887_p11) }
  0x1c   : > { %s1121_s5 = smov 116   ;;  %v892_v8 = vld [vmem:[%s1241_s8 + $0x14] sm:$0xf]  ;;  %s1123_s6 = smov 7   ;;  %v896_v9 = vld [vmem:[%s1241_s8 + $0x24] sm:$0xf] }
  0x1d   : > { %s1124_s7 = smov 97   ;;  %v895_v10 = vld [vmem:[%s1241_s8 + $0x20] sm:$0xf]  ;;  %s1125_s9 = smov 45   ;;  %v900_v11 = vld [vmem:[%s1241_s8 + $0x34] sm:$0xf] }
  0x1e   : > { %249 = vrot.lane.b32.xlu1 %v890_v2, %s1118_s29  ;;  %s1126_s10 = smov 26   ;;  %v897_v12 = vld [vmem:[%s1241_s8 + $0x28] sm:$0xf]  ;;  %s1127_s11 = smov 121   ;;  %v898_v13 = vld [vmem:[%s1241_s8 + $0x2c] sm:$0xf] }
  0x1f   : > { %233 = vrot.lane.b32.xlu0 %v888_v3, %s1119_s30  ;;  %s1128_s22 = smov 64   ;;  %v899_v14 = vld [vmem:[%s1241_s8 + $0x30] sm:$0xf]  ;;  %s1129_s12 = smov 83   ;;  %v901_v15 = vld [vmem:[%s1241_s8 + $0x38] sm:$0xf] }
  0x20   : > { %s1130_s26 = smov 102   ;;  %v902_v16 = vld [vmem:[%s1241_s8 + $0x3c] sm:$0xf]  ;;  %s1131_s28 = smov 12   ;;  %vm260_vm5 = vcmask 765552   ;;  %vm279_vm6 = vcmask 1044384  }
  0x21   : > { %s1132_s29 = smov 31   ;;  %vm280_vm7 = vcmask 31748   ;;  %vm276_vm8 = vcmask 949248   ;;  %vm268_vm9 = vcmask 921352   ;;  %vm289_vm11 = vcmask 183352   ;;  %s1133_s8 = smov 127  }
  0x22   : > { %257 = vrot.lane.b32.xlu1 %v891_v4, %s1120_s4  ;;  %vm281_vm10 = vmor %vm280_vm7, %vm279_vm6  ;;  %vm297_vm12 = vcmask 339152   ;;  %vm305_vm13 = vcmask 494952   ;;  %vm313_vm14 = vcmask 650752   ;;  %vm340_vm15 = vcmask 1044424   ;;  %s1134_s30 = smov 126  }
  0x23   : > { %273 = vrot.lane.b32.xlu0 %v893_v5, %s1121_s5  ;;  %vm341_vm0 = vcmask 72708   ;;  %vm358_vm6 = vcmask 380152   ;;  %vm367_vm7 = vcmask 371712  }
  0x26   : > { %286 = vrot.lane.b32.xlu1 %v894_v7, %s1123_s6 }
  0x27   : > { %265 = vrot.lane.b32.xlu0 %v892_v8, %s1124_s7 }
  0x2a   : > { %302 = vrot.lane.b32.xlu1 %v896_v9, %s1125_s9 }
  0x2b   : > { %294 = vrot.lane.b32.xlu0 %v895_v10, %s1126_s10 }
  0x2e   : > { %334 = vrot.lane.b32.xlu1 %v900_v11, %s1127_s11 }
  0x2f   : > { %310 = vrot.lane.b32.xlu0 %v897_v12, %s1128_s22 }
  0x32   : > { %326 = vrot.lane.b32.xlu1 %v899_v14, %s1130_s26 }
  0x33   : > { %318 = vrot.lane.b32.xlu0 %v898_v13, %s1129_s12 }
  0x36   : > { %355 = vrot.lane.b32.xlu1 %v902_v16, %s1132_s29 }
  0x37   : > { %347 = vrot.lane.b32.xlu0 %v901_v15, %s1131_s28 }
  0x8c   : > { %v242_v17 = vpop.permute.xlu1 %241 }
  0x8d   : > { %v226_v18 = vpop.permute.xlu0 %225 }
  0x8e   : > { %229 = vst.msk [vmem:[#allocation2] sm:$0xf] %vm228_vm1, %v226_v18  ;;  %vm321_vm1 = vcmask 806552  }
  0x90   : > { %v250_v19 = vpop.permute.xlu1 %249 }
  0x91   : > { %v234_v20 = vpop.permute.xlu0 %233 }
  0x92   : > { %237 = vst.msk [vmem:[#allocation2] sm:$0xf] %vm236_vm2, %v234_v20  ;;  %vm337_vm2 = vcmask 990208  }
  0x93   : > { %245 = vst.msk [vmem:[#allocation2] sm:$0xf] %vm244_vm3, %v242_v17  ;;  %vm329_vm3 = vcmask 962352  }
  0x94   : > { %253 = vst.msk [vmem:[#allocation2] sm:$0xf] %vm252_vm4, %v250_v19  ;;  %v258_v21 = vpop.permute.xlu1 %257  ;;  %vm342_vm4 = vmor %vm341_vm0, %vm340_vm15 }
  0x95   : > { %v274_v22 = vpop.permute.xlu0 %273  ;;  %261 = vst.msk [vmem:[#allocation2] sm:$0xf] %vm260_vm5, %v258_v21  ;;  %vm350_vm5 = vcmask 224352  }
  0x96   : > { %v275_v23 = vrot.slane %v274_v22, 4 }
  0x98   : > { %v287_v24 = vpop.permute.xlu1 %286  ;;  %v277_v26 = vsel %vm276_vm8, %v275_v23, %v274_v22  ;;  %vm381_vm8 = vcmask 1039360  }
  0x99   : > { %v266_v25 = vpop.permute.xlu0 %265 }
  0x9a   : > { %269 = vst.msk [vmem:[#allocation2] sm:$0xf] %vm268_vm9, %v266_v25  ;;  %vm389_vm9 = vcmask 375812  }
  0x9b   : > { %282 = vst.msk [vmem:[#allocation2] sm:$0xff] %vm281_vm10, %v277_v26  ;;  %vm402_vm10 = vcmask 1031168  }
  0x9c   : > { %290 = vst.msk [vmem:[#allocation2 + $0x4] sm:$0xf] %vm289_vm11, %v287_v24  ;;  %v303_v27 = vpop.permute.xlu1 %302 }
  0x9d   : > { %v295_v28 = vpop.permute.xlu0 %294 }
  0x9e   : > { %298 = vst.msk [vmem:[#allocation2 + $0x4] sm:$0xf] %vm297_vm12, %v295_v28 }
  0x9f   : > { %306 = vst.msk [vmem:[#allocation2 + $0x4] sm:$0xf] %vm305_vm13, %v303_v27 }
  0xa0   : > { %v335_v29 = vpop.permute.xlu1 %334 }
  0xa1   : > { %v311_v30 = vpop.permute.xlu0 %310  ;;  %v336_v31 = vrot.slane %v335_v29, 4 }
  0xa2   : > { %314 = vst.msk [vmem:[#allocation2 + $0x4] sm:$0xf] %vm313_vm14, %v311_v30 }
  0xa3   : > { %v338_v34 = vsel %vm337_vm2, %v336_v31, %v335_v29 }
  0xa4   : > { %v327_v33 = vpop.permute.xlu1 %326 }
  0xa5   : > { %v319_v32 = vpop.permute.xlu0 %318 }
  0xa6   : > { %322 = vst.msk [vmem:[#allocation2 + $0x4] sm:$0xf] %vm321_vm1, %v319_v32 }
  0xa7   : > { %330 = vst.msk [vmem:[#allocation2 + $0x4] sm:$0xf] %vm329_vm3, %v327_v33 }
  0xa8   : > { %343 = vst.msk [vmem:[#allocation2 + $0x4] sm:$0xff] %vm342_vm4, %v338_v34  ;;  %v356_v36 = vpop.permute.xlu1 %355 }
  0xa9   : > { %v348_v35 = vpop.permute.xlu0 %347 }
  0xaa   : > { %351 = vst.msk [vmem:[#allocation2 + $0x8] sm:$0xf] %vm350_vm5, %v348_v35 }
  0xab   : > { %359 = vst.msk [vmem:[#allocation2 + $0x8] sm:$0xf] %vm358_vm6, %v356_v36 }
  0xaf   : > { %v360_v37 = vld [vmem:[#allocation2] sm:$0xff] }
  0xb0   : > { %v363_v38 = vcombine.high %v360_v37, %v360_v37  ;;  %365 = vst [vmem:[#allocation3] sm:$0xf] %v360_v37  ;;  %377 = vrot.lane.b32.xlu1 %v360_v37, %s1133_s8  ;;  %v373_v39 = vcombine.low %v360_v37, %v360_v37 }
  0xb2   : > { %366 = vst [vmem:[#allocation3 + $0x8] sm:$0xf] %v363_v38  ;;  %375 = vrot.lane.b32.xlu0 %v373_v39, %s1133_s8  ;;  %v1046_v40 = vld [vmem:[#allocation2 + $0x8] ss:$0 sps:$4 sm:$0xff]  }
  0xb3   : > { %v361_v41 = vld [vmem:[#allocation2 + $0x8] sm:$0xf] }
  0xb4   : > { %396 = vrot.lane.b32.xlu1 %v360_v37, %s1134_s30  ;;  %368 = vst.msk [vmem:[#allocation3 + $0x10] sm:$0xf] %vm367_vm7, %v361_v41  ;;  %v392_v42 = vld [vmem:[#allocation2 + $0x8] sm:$0xf] }
  0xb6   : > { %379 = vrot.lane.b32.xlu0 %v1046_v40, %s1133_s8 }
  0xb8   : > { %400 = vrot.lane.b32.xlu1 %v392_v42, %s1134_s30 }
  0xba   : > { %398 = vrot.lane.b32.xlu0 %v363_v38, %s1134_s30 }
 0x122   : > { %v378_v43 = vpop.permute.xlu1 %377 }
 0x124   : > { %v376_v44 = vpop.permute.xlu0 %375 }
 0x125   : > { %v382_v45 = vsel %vm381_vm8, %v376_v44, %v378_v43 }
 0x126   : > { %387 = vst [vmem:[#allocation3] sm:$0xf0] %v382_v45  ;;  %v397_v46 = vpop.permute.xlu1 %396 }
 0x128   : > { %v380_v47 = vpop.permute.xlu0 %379 }
 0x129   : > { %v383_v48 = vsel %vm381_vm8, %v378_v43, %v380_v47  ;;  %390 = vst.msk [vmem:[#allocation3 + $0x10] sm:$0xf0] %vm389_vm9, %v380_v47 }
 0x12a   : > { %388 = vst [vmem:[#allocation3 + $0x8] sm:$0xf0] %v383_v48  ;;  %v401_v49 = vpop.permute.xlu1 %400 }
 0x12b   : > { %410 = vst.msk [vmem:[#allocation3 + $0x28] sm:$0xf] %vm367_vm7, %v401_v49 }
 0x12c   : > { %v399_v50 = vpop.permute.xlu0 %398 }
 0x12d   : > { %v403_v51 = vsel %vm402_vm10, %v397_v46, %v399_v50  ;;  %v404_v52 = vsel %vm402_vm10, %v399_v50, %v401_v49 }
 0x12e   : > { %408 = vst [vmem:[#allocation3 + $0x18] sm:$0xf] %v403_v51  ;;  %409 = vst [vmem:[#allocation3 + $0x20] sm:$0xf] %v404_v52 }
 0x12f PF: > { %vm428_vm11 = vcmask 1043456   ;;  %v1135_v55 = vmov 0.0|0.0   ;;  %vm1136_vm12 = vmmov 1   ;;  %v412_v61 = vld [vmem:[#allocation3] sm:$0xff]  ;;  %vm1137_vm14 = vmmov 0   ;;  %v418_v2 = vld [vmem:[%s1251_s24] sm:$0xff] }
 0x130   : > { %945 = vmatprep.subr.bf16.mxu1 %v1135_v55  ;;  %vm1274_vm13 = vmpackc.low %vm428_vm11, %vm1136_vm12  ;;  %v414_v58 = vld [vmem:[#allocation3 + $0x10] sm:$0xff]  ;;  %v1138_v63 = vmov 0.0   ;;  %v1139_v1 = vmov 0   ;;  %vm424_vm15 = vcmask 97280   ;;  %vm597_vm0 = vcmask 138240   ;;  %s1141_s24 = smov 109  }
 0x131   : > { %v413_v53 = vld [vmem:[#allocation3 + $0x8] sm:$0xff]  ;;  %936 = vmatprep.mubr.msk.f32.mxu1 %vm1137_vm14, %v1138_v63  ;;  %502 = vmatprep.mubr.f32.mxu0 %v1138_v63  ;;  %v411_v3 = vld [vmem:[%s1246_s21] sm:$0xff]  ;;  %s1140_s21 = smov 9   ;;  %s1142_s4 = smov 14   ;;  %vm630_vm1 = vcmask 113664   ;;  %vm670_vm2 = vcmask 72704  }
 0x132   : > { %v417_v59 = vld [vmem:[#allocation3 + $0x28] sm:$0xf]  ;;  %1047 = vset.pattern.permute.xlu0 %v1139_v1  ;;  %s1143_s5 = smov 71   ;;  %s1144_s6 = smov 90  }
 0x133   : > { %v946_v60 = vpack.c.bf16 %v417_v59, %v414_v58  ;;  %421 = vperm.xlu0 %1047, %v418_v2   ;;  %s1145_s7 = smov 33   ;;  %s1146_s9 = smov 52  }
 0x134   : > { %s1147_s10 = smov 123   ;;  %s1148_s11 = smov 85  }
 0x135   : > { %v416_v54 = vld [vmem:[#allocation3 + $0x20] sm:$0xf]  ;;  %v415_v62 = vld [vmem:[#allocation3 + $0x18] sm:$0xf]  ;;  %948 = vmatpush3.bf16.msk.msra.mxu1 %vm1274_vm13, %v946_v60  ;;  %s1149_s22 = smov 104   ;;  %s1150_s12 = smov 47  }
 0x136   : > { %v939_v56 = vpack.c.bf16 %v416_v54, %v413_v53  ;;  %v942_v0 = vpack.c.bf16 %v415_v62, %v412_v61  ;;  %s1151_s26 = smov 66   ;;  %s1152_s28 = smov 118  }
 0x137   : > { %s1153_s29 = smov 28   ;;  %s1154_s8 = smov 99  }
 0x138   : > { %941 = vmatprep.subr.msk.bf16.mxu0 %vm1274_vm13, %v939_v56  ;;  %937 = vmatmul.mubr.msk.f32.vlgmr.msra.gmra.mrb[0].mxu1 %vm424_vm15, %v411_v3  ;;  %s949_s30 = smul.u32 (%p1221_p5), 48, %s1102_s15 }
 0x139   : > { %944 = vmatpush1.bf16.msk.msra.mxu0 %vm1274_vm13, %v942_v0 }
 0x13a   : > { %s694_s23 = sadd.s32 (%p1221_p5), %s1098_s14, %s949_s30 }
 0x13c   : > { %905 = vmatmul.mubr.msk.f32.vlgmr.msra.gmra.mrb[0].mxu0 %vm424_vm15, %v411_v3 }
 0x1b2   : > { %v422_v4 = vpop.permute.xlu0 %421 }
 0x20b   : > { %v575_v5 = vpop.f32.mrb[0].mxu1 }
 0x20c   : > { %v576_v6 = vadd.f32 %v575_v5, %v422_v4  ;;  %v938_v8 = vpop.f32.mrb[1].mxu1 }
 0x20e   : > { %v581_v11 = vsub.f32 0.0, %v576_v6 }
 0x20f   : > { %v504_v7 = vpop.f32.mrb[0].mxu0 }
 0x210   : > { %v505_v9 = vadd.f32 %v504_v7, %v422_v4  ;;  %v506_v10 = vpop.f32.mrb[1].mxu0  ;;  %v586_v14 = vmul.f32 1.442695, %v581_v11 }
 0x211   : > { %v507_v12 = vadd.f32 %v506_v10, %v422_v4 }
 0x212   : > { %v579_v13 = vsub.f32 0.0, %v505_v9  ;;  %1048 = vpow2.f32 %v586_v14 }
 0x213   : > { %v580_v16 = vsub.f32 0.0, %v507_v12 }
 0x214   : > { %v582_v15 = vmul.f32 1.442695, %v579_v13 }
 0x215   : > { %v584_v17 = vmul.f32 1.442695, %v580_v16 }
 0x216   : > { %1050 = vpow2.f32 %v582_v15 }
 0x217   : > { %1052 = vpow2.f32 %v584_v17 }
 0x21c   : > { %v1049_v18 = vpop.eup %1048 }
 0x21d   : > { %v590_v20 = vadd.f32 1.0, %v1049_v18 }
 0x21f   : > { %1054 = vrcp.f32 %v590_v20 }
 0x220   : > { %v1051_v19 = vpop.eup %1050 }
 0x221   : > { %v588_v21 = vadd.f32 1.0, %v1051_v19  ;;  %v1053_v22 = vpop.eup %1052 }
 0x222   : > { %v589_v23 = vadd.f32 1.0, %v1053_v22 }
 0x223   : > { %1056 = vrcp.f32 %v588_v21 }
 0x224   : > { %1058 = vrcp.f32 %v589_v23 }
 0x229   : > { %v1055_v24 = vpop.eup %1054 }
 0x22a   : > { %v596_v26 = vmul.f32 %v1055_v24, %v576_v6 }
 0x22c   : > { %668 = vrot.lane.b32.xlu0 %v596_v26, %s1140_s21 }
 0x22d   : > { %v1057_v25 = vpop.eup %1056 }
 0x22e   : > { %v594_v27 = vmul.f32 %v1057_v25, %v505_v9  ;;  %v1059_v28 = vpop.eup %1058 }
 0x22f   : > { %v595_v29 = vmul.f32 %v1059_v28, %v507_v12 }
 0x230   : > { %598 = vst.msk [vmem:[%s1253_s25] sm:$0xff] %vm597_vm0, %v594_v27  ;;  %600 = vrot.lane.b32.xlu1 %v594_v27, %s1141_s24  ;;  %626 = vrot.lane.b32.xlu0 %v594_v27, %s1142_s4 }
 0x234   : > { %610 = vrot.lane.b32.xlu1 %v594_v27, %s1143_s5  ;;  %605 = vrot.lane.b32.xlu0 %v594_v27, %s1144_s6 }
 0x237   : > { %v754_v49 = vld [vmem:[%s1253_s25] sm:$0xff] (%p1221_p5) }
 0x238   : > { %620 = vrot.lane.b32.xlu1 %v594_v27, %s1145_s7  ;;  %615 = vrot.lane.b32.xlu0 %v594_v27, %s1146_s9 }
 0x23c   : > { %628 = vrot.lane.b32.xlu1 %v595_v29, %s1142_s4  ;;  %635 = vrot.lane.b32.xlu0 %v595_v29, %s1147_s10 }
 0x240   : > { %666 = vrot.lane.b32.xlu1 %v595_v29, %s1140_s21  ;;  %645 = vrot.lane.b32.xlu0 %v595_v29, %s1148_s11  ;;  %s926_s21 = sshll.u32 (%p1221_p5), %s694_s23, 3 }
 0x241   : > { %s696_s15 = scalar_lea.vmem (%p1221_p5), %s1365_s3, %s926_s21 }
 0x242   : > { %755 = vst [vmem:[%s696_s15] sm:$0xff] (%p1221_p5), %v754_v49 }
 0x244   : > { %640 = vrot.lane.b32.xlu1 %v595_v29, %s1149_s22  ;;  %655 = vrot.lane.b32.xlu0 %v595_v29, %s1150_s12 }
 0x248   : > { %650 = vrot.lane.b32.xlu1 %v595_v29, %s1151_s26  ;;  %675 = vrot.lane.b32.xlu0 %v596_v26, %s1152_s28 }
 0x24c   : > { %660 = vrot.lane.b32.xlu1 %v595_v29, %s1153_s29 }
 0x250   : > { %680 = vrot.lane.b32.xlu1 %v596_v26, %s1154_s8 }
 0x29e   : > { %v669_v30 = vpop.permute.xlu0 %668 }
 0x2a2   : > { %v601_v31 = vpop.permute.xlu1 %600  ;;  %v627_v32 = vpop.permute.xlu0 %626 }
 0x2a3   : > { %908 = vst.msk [vmem:[%s1253_s25 + $0x8] sm:$0xff] %vm597_vm0, %v601_v31 }
 0x2a6   : > { %v611_v33 = vpop.permute.xlu1 %610  ;;  %v606_v34 = vpop.permute.xlu0 %605 }
 0x2a7   : > { %910 = vst.msk [vmem:[%s1253_s25 + $0x18] sm:$0xff] %vm597_vm0, %v611_v33  ;;  %909 = vst.msk [vmem:[%s1253_s25 + $0x10] sm:$0xff] %vm597_vm0, %v606_v34 }
 0x2aa   : > { %v621_v35 = vpop.permute.xlu1 %620  ;;  %v616_v36 = vpop.permute.xlu0 %615  ;;  %v756_v50 = vld [vmem:[%s1253_s25 + $0x8] sm:$0xff] (%p1221_p5) }
 0x2ab   : > { %912 = vst.msk [vmem:[%s1253_s25 + $0x28] sm:$0xff] %vm597_vm0, %v621_v35  ;;  %911 = vst.msk [vmem:[%s1253_s25 + $0x20] sm:$0xff] %vm597_vm0, %v616_v36 }
 0x2ac   : > { %757 = vst [vmem:[%s696_s15 + $0x18] sm:$0xff] (%p1221_p5), %v756_v50 }
 0x2ae   : > { %v629_v37 = vpop.permute.xlu1 %628  ;;  %v636_v39 = vpop.permute.xlu0 %635  ;;  %v758_v51 = vld [vmem:[%s1253_s25 + $0x10] sm:$0xff] (%p1221_p5)  ;;  %v760_v52 = vld [vmem:[%s1253_s25 + $0x18] sm:$0xff] (%p1221_p5) }
 0x2af   : > { %v631_v38 = vsel %vm630_vm1, %v627_v32, %v629_v37  ;;  %914 = vst.msk [vmem:[%s1253_s25 + $0x38] sm:$0xff] %vm597_vm0, %v636_v39  ;;  %759 = vst [vmem:[%s696_s15 + $0x30] sm:$0xff] (%p1221_p5), %v758_v51 }
 0x2b0   : > { %913 = vst.msk [vmem:[%s1253_s25 + $0x30] sm:$0xff] %vm597_vm0, %v631_v38  ;;  %761 = vst [vmem:[%s696_s15 + $0x48] sm:$0xff] (%p1221_p5), %v760_v52 }
 0x2b2   : > { %v667_v40 = vpop.permute.xlu1 %666  ;;  %v646_v42 = vpop.permute.xlu0 %645  ;;  %v762_v53 = vld [vmem:[%s1253_s25 + $0x20] sm:$0xff] (%p1221_p5)  ;;  %v764_v54 = vld [vmem:[%s1253_s25 + $0x28] sm:$0xff] (%p1221_p5) }
 0x2b3   : > { %v671_v41 = vsel %vm670_vm2, %v667_v40, %v669_v30  ;;  %916 = vst.msk [vmem:[%s1253_s25 + $0x48] sm:$0xff] %vm597_vm0, %v646_v42  ;;  %763 = vst [vmem:[%s696_s15 + $0x60] sm:$0xff] (%p1221_p5), %v762_v53 }
 0x2b4   : > { %920 = vst.msk [vmem:[%s1253_s25 + $0x68] sm:$0xff] %vm597_vm0, %v671_v41  ;;  %765 = vst [vmem:[%s696_s15 + $0x78] sm:$0xff] (%p1221_p5), %v764_v54 }
 0x2b6   : > { %v641_v43 = vpop.permute.xlu1 %640  ;;  %v656_v44 = vpop.permute.xlu0 %655  ;;  %v768_v56 = vld [vmem:[%s1253_s25 + $0x38] sm:$0xff] (%p1221_p5) }
 0x2b7   : > { %915 = vst.msk [vmem:[%s1253_s25 + $0x40] sm:$0xff] %vm597_vm0, %v641_v43  ;;  %918 = vst.msk [vmem:[%s1253_s25 + $0x58] sm:$0xff] %vm597_vm0, %v656_v44  ;;  %v766_v55 = vld [vmem:[%s1253_s25 + $0x30] sm:$0xff] (%p1221_p5) }
 0x2b8   : > { %767 = vst [vmem:[%s696_s15 + $0x90] sm:$0xff] (%p1221_p5), %v766_v55  ;;  %769 = vst [vmem:[%s696_s15 + $0xa8] sm:$0xff] (%p1221_p5), %v768_v56 }
 0x2ba   : > { %v651_v45 = vpop.permute.xlu1 %650  ;;  %v676_v46 = vpop.permute.xlu0 %675  ;;  %v772_v58 = vld [vmem:[%s1253_s25 + $0x48] sm:$0xff] (%p1221_p5) }
 0x2bb   : > { %917 = vst.msk [vmem:[%s1253_s25 + $0x50] sm:$0xff] %vm597_vm0, %v651_v45  ;;  %921 = vst.msk [vmem:[%s1253_s25 + $0x70] sm:$0xff] %vm597_vm0, %v676_v46  ;;  %v780_v62 = vld [vmem:[%s1253_s25 + $0x68] sm:$0xff] (%p1221_p5) }
 0x2bc   : > { %773 = vst [vmem:[%s696_s15 + $0xd8] sm:$0xff] (%p1221_p5), %v772_v58  ;;  %781 = vst [vmem:[%s696_s15 + $0x138] sm:$0xff] (%p1221_p5), %v780_v62 }
 0x2bd   : > { %691 = sbr.rel (!%p1221_p5) target bundleno = 716 (0x2cc), region = 40 }
 0x2be   : > { %v661_v47 = vpop.permute.xlu1 %660  ;;  %v770_v57 = vld [vmem:[%s1253_s25 + $0x40] sm:$0xff] (%p1221_p5)  ;;  %v776_v60 = vld [vmem:[%s1253_s25 + $0x58] sm:$0xff] (%p1221_p5) }
 0x2bf   : > { %919 = vst.msk [vmem:[%s1253_s25 + $0x60] sm:$0xff] %vm597_vm0, %v661_v47  ;;  %771 = vst [vmem:[%s696_s15 + $0xc0] sm:$0xff] (%p1221_p5), %v770_v57 }
 0x2c0   : > { %777 = vst [vmem:[%s696_s15 + $0x108] sm:$0xff] (%p1221_p5), %v776_v60 }
 0x2c2   : > { %v681_v48 = vpop.permute.xlu1 %680  ;;  %v774_v59 = vld [vmem:[%s1253_s25 + $0x50] sm:$0xff] (%p1221_p5) }
 0x2c3   : > { %922 = vst.msk [vmem:[%s1253_s25 + $0x78] sm:$0xff] %vm597_vm0, %v681_v48  ;;  %v782_v63 = vld [vmem:[%s1253_s25 + $0x70] sm:$0xff] (%p1221_p5)  ;;  %775 = vst [vmem:[%s696_s15 + $0xf0] sm:$0xff] (%p1221_p5), %v774_v59 }
 0x2c4   : > { %783 = vst [vmem:[%s696_s15 + $0x150] sm:$0xff] %v782_v63 }
 0x2c6   : > { %v778_v61 = vld [vmem:[%s1253_s25 + $0x60] sm:$0xff] }
 0x2c7   : > { %779 = vst [vmem:[%s696_s15 + $0x120] sm:$0xff] %v778_v61 }
 0x2ca   : > { %v784_v0 = vld [vmem:[%s1253_s25 + $0x78] sm:$0xff] }
 0x2cb   : > { %785 = vst [vmem:[%s696_s15 + $0x168] sm:$0xff] %v784_v0 }
 0x2cc PF: > { %s13_s18 = sadd.s32 1, %s1114_s18   ;;  %s1369_s12 = smov %s1094_s13 }
 0x2cd   : > { %p10_p12 = scmp.ge.s32.totalorder %s13_s18, 8   ;;  %s1370_s13 = smov %s1232_s27 }
 0x2ce   : > { %s1371_s14 = smov %s1106_s16  ;;  %s1372_s15 = smov %s1110_s17 }
 0x2cf   : > { %s1373_s16 = smov %s1376_s19  ;;  %s1374_s17 = smov %s1380_s20 }
 0x2d0   :  { %12 = sbr.rel (!%p10_p12) target bundleno = 4 (0x4), region = 140 }

</bundles_post_ra>
